<compile_context>
chip_gen: v6e
topology: v6e:2x2x1
jax: 0.10.0
libtpu: 0.0.40
codegen_flags: <defaults>
</compile_context>

<pallas_src>
import functools

import jax
import jax.numpy as jnp
from jax.experimental import pallas as pl
from jax.experimental.pallas import tpu as pltpu


# ----------------------------------------------------------------------------
# Kernel 1: fused QKV projection   x @ [Wq*scale | Wk | Wv]  -> q, k, v
# ----------------------------------------------------------------------------
def _qkv_proj_kernel(x_ref, w_ref, q_ref, k_ref, v_ref, *, head_size):
    # x_ref: (TM, C), w_ref: (C, 3H), outputs: (TM, H) each.
    qkv = jnp.dot(x_ref[...], w_ref[...], preferred_element_type=jnp.float32)
    h = head_size
    q_ref[...] = qkv[:, 0 * h:1 * h].astype(q_ref.dtype)
    k_ref[...] = qkv[:, 1 * h:2 * h].astype(k_ref.dtype)
    v_ref[...] = qkv[:, 2 * h:3 * h].astype(v_ref.dtype)


def qkv_project(x, w_qkv, head_size, *, block_m=256):
    B, T, C = x.shape
    block_m = min(block_m, T)
    assert T % block_m == 0, "T must be divisible by block_m"

    out = jax.ShapeDtypeStruct((B, T, head_size), x.dtype)
    cost = pl.CostEstimate(
        flops=int(2 * B * T * C * 3 * head_size),
        transcendentals=0,
        bytes_accessed=int((x.size + w_qkv.size + 3 * B * T * head_size)
                           * x.dtype.itemsize),
    )
    return pl.pallas_call(
        functools.partial(_qkv_proj_kernel, head_size=head_size),
        out_shape=(out, out, out),
        grid_spec=pltpu.PrefetchScalarGridSpec(
            num_scalar_prefetch=0,
            grid=(B, T // block_m),
            in_specs=[
                pl.BlockSpec((None, block_m, C), lambda b, i: (b, i, 0)),
                # Fused weight stays VMEM-resident (constant block index).
                pl.BlockSpec((C, 3 * head_size), lambda b, i: (0, 0)),
            ],
            out_specs=[
                pl.BlockSpec((None, block_m, head_size), lambda b, i: (b, i, 0)),
                pl.BlockSpec((None, block_m, head_size), lambda b, i: (b, i, 0)),
                pl.BlockSpec((None, block_m, head_size), lambda b, i: (b, i, 0)),
            ],
        ),
        compiler_params=pltpu.CompilerParams(
            dimension_semantics=("parallel", "parallel"),
            vmem_limit_bytes=48 * 1024 * 1024,
        ),
        cost_estimate=cost,
    )(x, w_qkv)


# ----------------------------------------------------------------------------
# Kernel 2: causal flash attention (online softmax over kv tiles)
# ----------------------------------------------------------------------------
def _flash_kernel(q_ref, k_ref, v_ref, o_ref, m_scr, l_scr, acc_scr):
    # q_ref: (TQ, H), k_ref/v_ref: (TKV, H), o_ref: (TQ, H)
    qi = pl.program_id(1)
    ki = pl.program_id(2)

    @pl.when(ki == 0)
    def _init():
        m_scr[...] = jnp.full(m_scr.shape, -jnp.inf, dtype=m_scr.dtype)
        l_scr[...] = jnp.zeros(l_scr.shape, l_scr.dtype)
        acc_scr[...] = jnp.zeros(acc_scr.shape, acc_scr.dtype)

    def _scores():
        # q already carries the C**-0.5 scale; contract last dims so no
        # transposed copy of K is materialized.
        return jax.lax.dot_general(
            q_ref[...], k_ref[...],
            dimension_numbers=(((1,), (1,)), ((), ())),
            preferred_element_type=jnp.float32,
        )

    def _online_softmax_update(s):
        m_prev = m_scr[...]
        m_new = jnp.maximum(m_prev, jnp.max(s, axis=-1, keepdims=True))
        alpha = jnp.exp(m_prev - m_new)
        p = jnp.exp(s - m_new)
        l_scr[...] = alpha * l_scr[...] + jnp.sum(p, axis=-1, keepdims=True)
        acc_scr[...] = alpha * acc_scr[...] + jnp.dot(
            p.astype(v_ref.dtype), v_ref[...],
            preferred_element_type=jnp.float32)
        m_scr[...] = m_new

    # Fully-visible kv tiles below the diagonal: no mask work at all.
    @pl.when(ki < qi)
    def _off_diag():
        _online_softmax_update(_scores())

    # Diagonal tile: apply causal mask (block_q == block_kv => local r >= c).
    # The diagonal row always has >= 1 unmasked column, so -inf is NaN-safe.
    @pl.when(ki == qi)
    def _diag():
        s = _scores()
        row = jax.lax.broadcasted_iota(jnp.int32, s.shape, 0)
        col = jax.lax.broadcasted_iota(jnp.int32, s.shape, 1)
        s = jnp.where(row >= col, s, -jnp.inf)
        _online_softmax_update(s)

    # ki > qi: fully-masked tile -> skipped (index_map also suppresses its DMA).

    @pl.when(ki == pl.num_programs(2) - 1)
    def _finalize():
        l = l_scr[...]
        inv_l = pl.reciprocal(l, approx=True)      # EUP slot (otherwise idle)
        inv_l = inv_l * (2.0 - l * inv_l)          # one Newton step -> near-exact
        o_ref[...] = (acc_scr[...] * inv_l).astype(o_ref.dtype)
        # dropout (eval mode) == identity


def flash_attention(q, k, v, *, block_q=256, block_kv=256):
    B, T, H = q.shape
    block_q = min(block_q, T)
    block_kv = min(block_kv, T)
    assert block_q == block_kv, "diagonal-tile logic assumes block_q == block_kv"
    assert T % block_q == 0 and T % block_kv == 0
    nq = T // block_q
    nkv = T // block_kv

    def q_map(b, qi, ki):
        return (b, qi, 0)

    def kv_map(b, qi, ki):
        # Above-diagonal (skipped) steps re-point at the last needed kv block so
        # Pallas issues no new DMA for them.
        return (b, jnp.minimum(ki, qi), 0)

    cost = pl.CostEstimate(
        flops=int(2 * 2 * B * T * T * H * 0.5),      # QK^T + PV over causal half
        transcendentals=int(B * T * T * 0.5),        # exp over causal half
        bytes_accessed=int((q.size + k.size + v.size + B * T * H)
                           * q.dtype.itemsize),
    )

    return pl.pallas_call(
        _flash_kernel,
        out_shape=jax.ShapeDtypeStruct((B, T, H), q.dtype),
        grid_spec=pltpu.PrefetchScalarGridSpec(
            num_scalar_prefetch=0,
            grid=(B, nq, nkv),
            in_specs=[
                pl.BlockSpec((None, block_q, H), q_map),
                pl.BlockSpec((None, block_kv, H), kv_map),
                pl.BlockSpec((None, block_kv, H), kv_map),
            ],
            out_specs=pl.BlockSpec((None, block_q, H), q_map),
            scratch_shapes=[
                pltpu.VMEM((block_q, 1), jnp.float32),   # running max m
                pltpu.VMEM((block_q, 1), jnp.float32),   # running denom l
                pltpu.VMEM((block_q, H), jnp.float32),   # f32 output accumulator
            ],
        ),
        compiler_params=pltpu.CompilerParams(
            dimension_semantics=("parallel", "parallel", "arbitrary"),
            vmem_limit_bytes=48 * 1024 * 1024,   # explicit headroom (v7x: 64 MiB phys)
        ),
        cost_estimate=cost,
    )(q, k, v)


# ----------------------------------------------------------------------------
# Module-equivalent forward
# ----------------------------------------------------------------------------
def head_forward(x, wq, wk, wv, *, block_m=256, block_q=256, block_kv=256):
    """x: (B, T, C); wq/wk/wv: (C, H). Returns (B, T, H). Eval-mode Head.forward."""
    B, T, C = x.shape
    H = wq.shape[1]
    scale = float(C) ** (-0.5)
    # Fold the 1/sqrt(C) score scale into Wq and fuse the three projections into
    # a single (C, 3H) weight -> one wide MXU matmul instead of three skinny ones.
    w_qkv = jnp.concatenate([wq * scale, wk, wv], axis=1)
    q, k, v = qkv_project(x, w_qkv, H, block_m=block_m)
    return flash_attention(q, k, v, block_q=block_q, block_kv=block_kv)


def head_reference(x, wq, wk, wv):
    B, T, C = x.shape
    q = x @ wq
    k = x @ wk
    v = x @ wv
    wei = (q @ jnp.swapaxes(k, -2, -1)) * (C ** -0.5)
    mask = jnp.tril(jnp.ones((T, T), dtype=bool))
    wei = jnp.where(mask, wei, -jnp.inf)
    wei = jax.nn.softmax(wei, axis=-1)
    return wei @ v


if __name__ == "__main__":
    # Shapes consistent with the module: context_size T=256, n_embd C=384,
    # head_size H=64 (n_embd / 6 heads), batch B=2. Blocks of 128 exercise the
    # multi-tile causal-skip path at this small T (use 256 for large T on v6e/v7x).
    B, T, C, H = 2, 256, 384, 64

    key = jax.random.PRNGKey(0)
    kx, kq, kk, kv = jax.random.split(key, 4)

    x = jax.random.normal(kx, (B, T, C), dtype=jnp.float32)
    wq = jax.random.normal(kq, (C, H), dtype=jnp.float32) * (1.0 / (C ** 0.5))
    wk = jax.random.normal(kk, (C, H), dtype=jnp.float32) * (1.0 / (C ** 0.5))
    wv = jax.random.normal(kv, (C, H), dtype=jnp.float32) * (1.0 / (C ** 0.5))

    out = head_forward(x, wq, wk, wv, block_m=128, block_q=128, block_kv=128)
    out = jax.block_until_ready(out)

    ref = head_reference(x, wq, wk, wv)
    assert out.shape == (B, T, H), out.shape
    assert bool(jnp.allclose(out, ref, atol=1e-3, rtol=1e-3)), "mismatch vs reference"

    print("KERNEL_OK")
</pallas_src>

<mosaic_0001>
module attributes {stable_mosaic.version = 11 : i64} {
  func.func @_qkv_proj_kernel(%arg0: i32, %arg1: i32, %arg2: memref<1x128x384xf32, #tpu.memory_space<vmem>>, %arg3: memref<384x192xf32, #tpu.memory_space<vmem>>, %arg4: memref<1x128x64xf32, #tpu.memory_space<vmem>>, %arg5: memref<1x128x64xf32, #tpu.memory_space<vmem>>, %arg6: memref<1x128x64xf32, #tpu.memory_space<vmem>>) attributes {dimension_semantics = [#tpu.dimension_semantics<parallel>, #tpu.dimension_semantics<parallel>], iteration_bounds = array<i64: 2, 2>, scalar_prefetch = 0 : i64, scratch_operands = 0 : i64, tpu.core_type = #tpu.core_type<tc>, window_params = [{transform_indices = @transform_0, window_bounds = array<i64: 1, 128, 384>}, {pipeline_mode = #tpu.pipeline_mode<synchronous>, transform_indices = @transform_1, window_bounds = array<i64: 384, 192>}, {transform_indices = @transform_2, window_bounds = array<i64: 1, 128, 64>}, {transform_indices = @transform_3, window_bounds = array<i64: 1, 128, 64>}, {transform_indices = @transform_4, window_bounds = array<i64: 1, 128, 64>}]} {
    %c0 = arith.constant 0 : index
    %c0_0 = arith.constant 0 : index
    %c0_1 = arith.constant 0 : index
    %0 = vector.load %arg2[%c0, %c0_0, %c0_1] : memref<1x128x384xf32, #tpu.memory_space<vmem>>, vector<1x128x384xf32>
    %1 = vector.shape_cast %0 : vector<1x128x384xf32> to vector<128x384xf32>
    %c0_2 = arith.constant 0 : index
    %c0_3 = arith.constant 0 : index
    %2 = vector.load %arg3[%c0_2, %c0_3] : memref<384x192xf32, #tpu.memory_space<vmem>>, vector<384x192xf32>
    %cst = arith.constant dense<0.000000e+00> : vector<128x192xf32>
    %3 = tpu.matmul %1, %2, %cst {dimension_numbers = #tpu.dot_dimension_numbers<[1], [0], [0], [1], [0, 0, 1, 1], [], []>} : vector<128x384xf32>, vector<384x192xf32>, vector<128x192xf32> -> vector<128x192xf32>
    %4 = vector.extract_strided_slice %3 {offsets = [0, 0], sizes = [128, 64], strides = [1, 1]} : vector<128x192xf32> to vector<128x64xf32>
    %c0_4 = arith.constant 0 : index
    %c0_5 = arith.constant 0 : index
    %c0_6 = arith.constant 0 : index
    %5 = vector.load %arg4[%c0_4, %c0_5, %c0_6] : memref<1x128x64xf32, #tpu.memory_space<vmem>>, vector<1x128x64xf32>
    %6 = vector.shape_cast %5 : vector<1x128x64xf32> to vector<128x64xf32>
    %7 = vector.shape_cast %4 : vector<128x64xf32> to vector<1x128x64xf32>
    tpu.vector_store %arg4[%c0_4, %c0_5, %c0_6], %7 {strides = array<i32>} : memref<1x128x64xf32, #tpu.memory_space<vmem>>, vector<1x128x64xf32>,
    %8 = vector.extract_strided_slice %3 {offsets = [0, 64], sizes = [128, 64], strides = [1, 1]} : vector<128x192xf32> to vector<128x64xf32>
    %c0_7 = arith.constant 0 : index
    %c0_8 = arith.constant 0 : index
    %c0_9 = arith.constant 0 : index
    %9 = vector.load %arg5[%c0_7, %c0_8, %c0_9] : memref<1x128x64xf32, #tpu.memory_space<vmem>>, vector<1x128x64xf32>
    %10 = vector.shape_cast %9 : vector<1x128x64xf32> to vector<128x64xf32>
    %11 = vector.shape_cast %8 : vector<128x64xf32> to vector<1x128x64xf32>
    tpu.vector_store %arg5[%c0_7, %c0_8, %c0_9], %11 {strides = array<i32>} : memref<1x128x64xf32, #tpu.memory_space<vmem>>, vector<1x128x64xf32>,
    %12 = vector.extract_strided_slice %3 {offsets = [0, 128], sizes = [128, 64], strides = [1, 1]} : vector<128x192xf32> to vector<128x64xf32>
    %c0_10 = arith.constant 0 : index
    %c0_11 = arith.constant 0 : index
    %c0_12 = arith.constant 0 : index
    %13 = vector.load %arg6[%c0_10, %c0_11, %c0_12] : memref<1x128x64xf32, #tpu.memory_space<vmem>>, vector<1x128x64xf32>
    %14 = vector.shape_cast %13 : vector<1x128x64xf32> to vector<128x64xf32>
    %15 = vector.shape_cast %12 : vector<128x64xf32> to vector<1x128x64xf32>
    tpu.vector_store %arg6[%c0_10, %c0_11, %c0_12], %15 {strides = array<i32>} : memref<1x128x64xf32, #tpu.memory_space<vmem>>, vector<1x128x64xf32>,
    return
  }
  func.func @transform_0(%arg0: i32, %arg1: i32) -> (i32, i32, i32) {
    %c0_i32 = arith.constant 0 : i32
    %c0_i32_0 = arith.constant 0 : i32
    return %arg0, %arg1, %c0_i32 : i32, i32, i32
  }
  func.func @transform_1(%arg0: i32, %arg1: i32) -> (i32, i32) {
    %c0_i32 = arith.constant 0 : i32
    %c0_i32_0 = arith.constant 0 : i32
    %c0_i32_1 = arith.constant 0 : i32
    return %c0_i32, %c0_i32_0 : i32, i32
  }
  func.func @transform_2(%arg0: i32, %arg1: i32) -> (i32, i32, i32) {
    %c0_i32 = arith.constant 0 : i32
    %c0_i32_0 = arith.constant 0 : i32
    return %arg0, %arg1, %c0_i32 : i32, i32, i32
  }
  func.func @transform_3(%arg0: i32, %arg1: i32) -> (i32, i32, i32) {
    %c0_i32 = arith.constant 0 : i32
    %c0_i32_0 = arith.constant 0 : i32
    return %arg0, %arg1, %c0_i32 : i32, i32, i32
  }
  func.func @transform_4(%arg0: i32, %arg1: i32) -> (i32, i32, i32) {
    %c0_i32 = arith.constant 0 : i32
    %c0_i32_0 = arith.constant 0 : i32
    return %arg0, %arg1, %c0_i32 : i32, i32, i32
  }
}

</mosaic_0001>

<bundles_post_ra>
// kernel: tpu_custom_call.1
= control target key start
LH: loop header
LB: loop body
LE: loop exit
PB: predicated region body
PF: predicated region fallthrough
CT: control target
= control target key end

     0   :  { %10 = vsyncpa [#allocation3], 0  ;;  %s1894_s0 = inlined_call_operand.hbm [shape: f32[2,256,384], index: 0, kind: input, shape index: {}]   ;;  %s1895_s1 = inlined_call_operand.vmem [shape: f32[384,192], index: 1, kind: input, shape index: {}]   ;;  %s1896_s2 = inlined_call_operand.vmem [shape: f32[2,256,64], index: 2, kind: output, shape index: {0}]   ;;  %s1897_s3 = inlined_call_operand.vmem [shape: f32[2,256,64], index: 3, kind: output, shape index: {1}]   ;;  %s1898_s4 = inlined_call_operand.vmem [shape: f32[2,256,64], index: 4, kind: output, shape index: {2}]  }
   0x1   :  { %12 = vsyncpa [#allocation3 + $0x1], 0  ;;  %s1295_s15 = smov 0   ;;  %s1297_s16 = smov 0  }
   0x2   :  { %s1299_s17 = smov 0   ;;  %s1301_s18 = smov 0  }
   0x3   :  { %s1303_s19 = smov 0   ;;  %s1305_s20 = smov 0  }
   0x4   :  { %s1307_s21 = smov 0   ;;  %s1309_s22 = smov 0  }
   0x5 LB: > { %s1071_s23 = sadd.s32 4294967295, %s1263_s22   ;;  %s27_s24 = sadd.s32 1, %s1255_s20  ;;  %s1263_s22 = sphi %s1309_s22, %s18_s22   ;;  %s1259_s21 = sphi %s1307_s21, %s1910_s21   ;;  %s1255_s20 = sphi %s1305_s20, %s1909_s20   ;;  %s1251_s19 = sphi %s1303_s19, %s1908_s19   ;;  %s1247_s18 = sphi %s1301_s18, %s1907_s18   ;;  %s1243_s17 = sphi %s1299_s17, %s1906_s17   ;;  %s1239_s16 = sphi %s1297_s16, %s1905_s16   ;;  %s1235_s15 = sphi %s1295_s15, %s1904_s15  }
   0x6   : > { %p28_p0 = scmp.ge.s32.totalorder %s27_s24, 2  ;;  %s30_s25 = sadd.s32 1, %s1259_s21 }
   0x7   : > { %s39_s26 = sadd.s32 1, %s1243_s17  ;;  %p46_p1 = scmp.ne.s32.totalorder %s1243_s17, %s1239_s16 }
   0x8   : > { %s1912_s24 = smov (%p28_p0, %s27_s24), 0  ;;  %s1914_s25 = smov (!%p28_p0, %s30_s25), %s1259_s21 }
   0x9   : > { %s35_s27 = ssub.s32 %s1255_s20, %s1912_s24  ;;  %p47_p2 = scmp.eq.s32.totalorder %s1263_s22, 0 }
   0xa   : > { %p32_p3 = scmp.ge.s32.totalorder %s1914_s25, 2  ;;  %p52_p4 = scmp.ne.s32.totalorder %s1239_s16, %s1235_s15 }
   0xb   : > { %p48_p5 = por %p47_p2, %p46_p1  ;;  %p53_p6 = scmp.eq.s32.totalorder %s1071_s23, 0 }
   0xc   : > { %s1916_s25 = smov (%p32_p3, %s1914_s25), 0  ;;  %p1100_p8 = scmp.lt.s32.totalorder %s1263_s22, 4 }
   0xd   : > { %1900 = sst [smem:[#allocation5_spill]] %s1916_s25  ;;  %p1348_p7 = por %p53_p6, %p52_p4 }
   0xe   : > { %s34_s29 = ssub.s32 %s1259_s21, %s1916_s25  ;;  %s184_s5 = sand.u32 1, %s1243_s17  }
   0xf   : > { %s36_s30 = sor.u32 %s35_s27, %s34_s29  ;;  %s1090_s6 = smul.u32 384, %s184_s5 }
  0x10   : > { %p37_p9 = scmp.eq.s32.totalorder %s36_s30, 0  ;;  %p1356_p10 = pnand %p1100_p8, %p48_p5 }
  0x11   : > { %s1091_s9 = smul.u32 48, %s1255_s20  ;;  %s188_s11 = scalar_lea.vmem [#allocation2], %s1090_s6 }
  0x12   : > { %s1361_s8 = scalar_select %p37_p9, %s1243_s17, %s39_s26  }
  0x13   : > { %s1092_s10 = smul.u32 96, %s1259_s21  ;;  %s198_s12 = sshll.u32 %s188_s11, 4  ;;  %s199_s12 = int_to_ptr.vmem [resolvable:$true] %s198_s12 }
  0x14   : > { %p1078_p11 = scmp.ge.s32.totalorder %s1263_s22, 1  ;;  %s185_s29 = scalar_lea.sflag [#allocation3], %s184_s5 }
  0x15   : > { %s195_s13 = sadd.s32 %s1092_s10, %s1091_s9  ;;  %p1171_p12 = pneg %p1356_p10 }
  0x16   : > { %s1077_s14 = sshll.u32 %s195_s13, 7  ;;  %s1182_s30 = scalar_lea.vmem %s199_s12, 6144 }
  0x17   : > { %s197_s27 = scalar_lea.hbm %s1894_s0, %s1077_s14  ;;  %p1183_p13 = scmp.ne.s32.totalorder %s199_s12, %s1182_s30 }
  0x18   : > { %s1265_s26 = smov [#allocation2]  }
  0x19   : > { %p1185_p0 = pnand %p1183_p13, %p1171_p12  ;;  %s1187_s25 = sshll.u32 %s1265_s26, 4  ;;  %s1188_s25 = int_to_ptr.vmem [resolvable:$false] %s1187_s25 }
  0x1a   : > { %s1189_s6 = scalar_lea.vmem %s1188_s25, 12288  ;;  %p1190_p2 = scmp.lt.s32.totalorder %s199_s12, %s1188_s25 }
  0x1b   : > { %p1186_p1 = pneg %p1185_p0  ;;  %p1191_p3 = scmp.lt.s32.totalorder %s1189_s6, %s1182_s30 }
  0x1d   : > { %p1192_p4 = por %p1191_p3, %p1190_p2 }
  0x1f   : > { %p1193_p5 = pnand %p1192_p4, %p1186_p1 }
  0x21   : > { %1196 = shalt.err (!%p1193_p5)
}
  0x22   : > { %s1266_s9 = smov 384   ;;  %s1267_s5 = smov 24  }
  0x23   : > { %1099 = dma.hbm_to_vmem [thread:$0]  (!%p1356_p10), %s197_s27, 6144, %s199_s12, %s185_s29, %s1266_s9, %s1266_s9, %s1267_s5  }
  0x24   : > { %p206_p6 = scmp.lt.s32.totalorder %s1263_s22, 5 }
  0x26   : > { %p207_p8 = pnand %p1078_p11, %p206_p6 }
  0x27   : > { %s212_s10 = sand.u32 (!%p207_p8), 1, %s1239_s16  }
  0x28   : > { %210 = sbr.rel (%p207_p8) target bundleno = 482 (0x1e2), region = 28  ;;  %s213_s25 = scalar_lea.sflag (!%p207_p8), [#allocation3], %s212_s10 }
  0x29   : > { %s1093_s11 = smul.u32 (!%p207_p8), 384, %s212_s10 }
  0x2b   : > { %s1377_s13 = scalar_lea.vmem (!%p207_p8), [#allocation2], %s1093_s11 }
  0x2d   : > { %1230 = dma.done.wait (%p1348_p7), %s213_s25, 6144  }
  0x2e   : > { %1232 = vsyncadd (%p1348_p7), %s213_s25, 4294961152  ;;  %v1268_v0 = vmov 0.0   ;;  %v373_v1 = vld [vmem:[%s1895_s1 + $0xf8] sm:$0xff]  ;;  %v372_v2 = vld [vmem:[%s1895_s1 + $0xf0] sm:$0xff]  ;;  %s1079_s7 = sshll.u32 %s1247_s18, 4  ;;  %p265_p7 = scmp.lt.s32.totalorder %s1251_s19, 1 }
  0x2f   : > { %663 = vmatprep.mubr.f32.mxu1 %v1268_v0  ;;  %v371_v3 = vld [vmem:[%s1895_s1 + $0xe8] sm:$0xff]  ;;  %438 = vmatprep.subr.mxu0 %v373_v1  ;;  %v370_v4 = vld [vmem:[%s1895_s1 + $0xe0] sm:$0xff]  ;;  %v369_v5 = vld [vmem:[%s1895_s1 + $0xd8] sm:$0xff]  ;;  %p267_p9 = scmp.lt.s32.totalorder %s1079_s7, 31  ;;  %vm760_vm0 = vcmask 523264   ;;  %s1269_s30 = smov 64  }
  0x30   : > { %439 = vmatpush1.msra.mxu0 %v372_v2  ;;  %v368_v6 = vld [vmem:[%s1895_s1 + $0xd0] sm:$0xff]  ;;  %v367_v7 = vld [vmem:[%s1895_s1 + $0xc8] sm:$0xff]  ;;  %v366_v8 = vld [vmem:[%s1895_s1 + $0xc0] sm:$0xff]  ;;  %s1918_s19 = smov (!%p265_p7, %s1251_s19), 1 }
  0x31   : > { %440 = vmatprep.subr.mxu0 %v371_v3  ;;  %v365_v9 = vld [vmem:[%s1895_s1 + $0xb8] sm:$0xff]  ;;  %v364_v10 = vld [vmem:[%s1895_s1 + $0xb0] sm:$0xff]  ;;  %v363_v11 = vld [vmem:[%s1895_s1 + $0xa8] sm:$0xff]  ;;  %s1920_s7 = smov (!%p267_p9, %s1079_s7), 31  ;;  %s1080_s12 = sshll.u32 %s1918_s19, 5 }
  0x32   : > { %441 = vmatpush1.msra.mxu0 %v370_v4  ;;  %v362_v12 = vld [vmem:[%s1895_s1 + $0xa0] sm:$0xff]  ;;  %v361_v13 = vld [vmem:[%s1895_s1 + $0x98] sm:$0xff]  ;;  %v360_v15 = vld [vmem:[%s1895_s1 + $0x90] sm:$0xff]  ;;  %s270_s14 = sadd.s32 %s1080_s12, %s1920_s7 }
  0x33   : > { %442 = vmatprep.subr.mxu0 %v369_v5  ;;  %v437_v14 = vld [vmem:[%s1895_s1 + $0x2f8] sm:$0xff]  ;;  %v436_v16 = vld [vmem:[%s1895_s1 + $0x2f0] sm:$0xff]  ;;  %v435_v17 = vld [vmem:[%s1895_s1 + $0x2e8] sm:$0xff]  ;;  %s1738_s15 = sshll.u32 %s270_s14, 3 }
  0x34   : > { %443 = vmatpush1.msra.mxu0 %v368_v6  ;;  %599 = vmatprep.subr.mxu1 %v437_v14  ;;  %v359_v18 = vld [vmem:[%s1895_s1 + $0x88] sm:$0xff]  ;;  %v434_v19 = vld [vmem:[%s1895_s1 + $0x2e0] sm:$0xff]  ;;  %v433_v21 = vld [vmem:[%s1895_s1 + $0x2d8] sm:$0xff]  ;;  %s1744_s23 = scalar_lea.vmem %s1896_s2, %s1738_s15  ;;  %s1750_s29 = scalar_lea.vmem %s1898_s4, %s1738_s15 }
  0x35   : > { %444 = vmatprep.subr.mxu0 %v367_v7  ;;  %600 = vmatpush1.msra.mxu1 %v436_v16  ;;  %v358_v20 = vld [vmem:[%s1895_s1 + $0x80] sm:$0xff]  ;;  %v432_v22 = vld [vmem:[%s1895_s1 + $0x2d0] sm:$0xff]  ;;  %v357_v23 = vld [vmem:[%s1895_s1 + $0x78] sm:$0xff]  ;;  %s1836_s6 = scalar_lea.vmem %s1897_s3, %s1738_s15 }
  0x36   : > { %445 = vmatpush1.msra.mxu0 %v366_v8  ;;  %601 = vmatprep.subr.mxu1 %v435_v17  ;;  %v431_v24 = vld [vmem:[%s1895_s1 + $0x2c8] sm:$0xff]  ;;  %v356_v25 = vld [vmem:[%s1895_s1 + $0x70] sm:$0xff]  ;;  %v430_v26 = vld [vmem:[%s1895_s1 + $0x2c0] sm:$0xff] }
  0x37   : > { %446 = vmatprep.subr.mxu0 %v365_v9  ;;  %602 = vmatpush1.msra.mxu1 %v434_v19  ;;  %v355_v27 = vld [vmem:[%s1895_s1 + $0x68] sm:$0xff]  ;;  %v429_v28 = vld [vmem:[%s1895_s1 + $0x2b8] sm:$0xff]  ;;  %v354_v29 = vld [vmem:[%s1895_s1 + $0x60] sm:$0xff] }
  0x38   : > { %447 = vmatpush1.msra.mxu0 %v364_v10  ;;  %603 = vmatprep.subr.mxu1 %v433_v21  ;;  %v428_v30 = vld [vmem:[%s1895_s1 + $0x2b0] sm:$0xff]  ;;  %v353_v31 = vld [vmem:[%s1895_s1 + $0x58] sm:$0xff]  ;;  %v427_v32 = vld [vmem:[%s1895_s1 + $0x2a8] sm:$0xff] }
  0x39   : > { %448 = vmatprep.subr.mxu0 %v363_v11  ;;  %604 = vmatpush1.msra.mxu1 %v432_v22  ;;  %v352_v33 = vld [vmem:[%s1895_s1 + $0x50] sm:$0xff]  ;;  %v426_v34 = vld [vmem:[%s1895_s1 + $0x2a0] sm:$0xff]  ;;  %v351_v35 = vld [vmem:[%s1895_s1 + $0x48] sm:$0xff] }
  0x3a   : > { %449 = vmatpush1.msra.mxu0 %v362_v12  ;;  %605 = vmatprep.subr.mxu1 %v431_v24  ;;  %v425_v36 = vld [vmem:[%s1895_s1 + $0x298] sm:$0xff]  ;;  %v350_v37 = vld [vmem:[%s1895_s1 + $0x40] sm:$0xff]  ;;  %v424_v38 = vld [vmem:[%s1895_s1 + $0x290] sm:$0xff] }
  0x3b   : > { %450 = vmatprep.subr.mxu0 %v361_v13  ;;  %606 = vmatpush1.msra.mxu1 %v430_v26  ;;  %v349_v39 = vld [vmem:[%s1895_s1 + $0x38] sm:$0xff]  ;;  %v423_v40 = vld [vmem:[%s1895_s1 + $0x288] sm:$0xff]  ;;  %v348_v41 = vld [vmem:[%s1895_s1 + $0x30] sm:$0xff] }
  0x3c   : > { %451 = vmatpush1.msra.mxu0 %v360_v15  ;;  %607 = vmatprep.subr.mxu1 %v429_v28  ;;  %v422_v42 = vld [vmem:[%s1895_s1 + $0x280] sm:$0xff]  ;;  %v347_v43 = vld [vmem:[%s1895_s1 + $0x28] sm:$0xff]  ;;  %v421_v44 = vld [vmem:[%s1895_s1 + $0x278] sm:$0xff] }
  0x3d   : > { %452 = vmatprep.subr.mxu0 %v359_v18  ;;  %608 = vmatpush1.msra.mxu1 %v428_v30  ;;  %v346_v45 = vld [vmem:[%s1895_s1 + $0x20] sm:$0xff]  ;;  %v420_v46 = vld [vmem:[%s1895_s1 + $0x270] sm:$0xff]  ;;  %v345_v47 = vld [vmem:[%s1895_s1 + $0x18] sm:$0xff] }
  0x3e   : > { %453 = vmatpush1.msra.mxu0 %v358_v20  ;;  %609 = vmatprep.subr.mxu1 %v427_v32  ;;  %v419_v48 = vld [vmem:[%s1895_s1 + $0x268] sm:$0xff]  ;;  %v344_v49 = vld [vmem:[%s1895_s1 + $0x10] sm:$0xff]  ;;  %v418_v50 = vld [vmem:[%s1895_s1 + $0x260] sm:$0xff] }
  0x3f   : > { %454 = vmatprep.subr.mxu0 %v357_v23  ;;  %610 = vmatpush1.msra.mxu1 %v426_v34  ;;  %v343_v51 = vld [vmem:[%s1895_s1 + $0x8] sm:$0xff]  ;;  %v417_v52 = vld [vmem:[%s1895_s1 + $0x258] sm:$0xff]  ;;  %v342_v53 = vld [vmem:[%s1895_s1] sm:$0xff] }
  0x40   : > { %455 = vmatpush1.msra.mxu0 %v356_v25  ;;  %611 = vmatprep.subr.mxu1 %v425_v36  ;;  %v416_v54 = vld [vmem:[%s1895_s1 + $0x250] sm:$0xff]  ;;  %v405_v55 = vld [vmem:[%s1895_s1 + $0x1f8] sm:$0xff]  ;;  %v415_v56 = vld [vmem:[%s1895_s1 + $0x248] sm:$0xff] }
  0x41   : > { %456 = vmatprep.subr.mxu0 %v355_v27  ;;  %612 = vmatpush1.msra.mxu1 %v424_v38  ;;  %v404_v57 = vld [vmem:[%s1895_s1 + $0x1f0] sm:$0xff]  ;;  %v414_v58 = vld [vmem:[%s1895_s1 + $0x240] sm:$0xff]  ;;  %v403_v59 = vld [vmem:[%s1895_s1 + $0x1e8] sm:$0xff] }
  0x42   : > { %457 = vmatpush1.msra.mxu0 %v354_v29  ;;  %613 = vmatprep.subr.mxu1 %v423_v40  ;;  %v413_v60 = vld [vmem:[%s1895_s1 + $0x238] sm:$0xff]  ;;  %v402_v61 = vld [vmem:[%s1895_s1 + $0x1e0] sm:$0xff]  ;;  %v412_v62 = vld [vmem:[%s1895_s1 + $0x230] sm:$0xff] }
  0x43   : > { %458 = vmatprep.subr.mxu0 %v353_v31  ;;  %614 = vmatpush1.msra.mxu1 %v422_v42  ;;  %v401_v63 = vld [vmem:[%s1895_s1 + $0x1d8] sm:$0xff]  ;;  %v411_v1 = vld [vmem:[%s1895_s1 + $0x228] sm:$0xff]  ;;  %v400_v2 = vld [vmem:[%s1895_s1 + $0x1d0] sm:$0xff] }
  0x44   : > { %459 = vmatpush1.msra.mxu0 %v352_v33  ;;  %615 = vmatprep.subr.mxu1 %v421_v44  ;;  %v410_v3 = vld [vmem:[%s1895_s1 + $0x220] sm:$0xff]  ;;  %v399_v4 = vld [vmem:[%s1895_s1 + $0x1c8] sm:$0xff]  ;;  %v409_v5 = vld [vmem:[%s1895_s1 + $0x218] sm:$0xff] }
  0x45   : > { %460 = vmatprep.subr.mxu0 %v351_v35  ;;  %616 = vmatpush1.msra.mxu1 %v420_v46  ;;  %v398_v6 = vld [vmem:[%s1895_s1 + $0x1c0] sm:$0xff]  ;;  %v408_v7 = vld [vmem:[%s1895_s1 + $0x210] sm:$0xff]  ;;  %v397_v8 = vld [vmem:[%s1895_s1 + $0x1b8] sm:$0xff] }
  0x46   : > { %461 = vmatpush1.msra.mxu0 %v350_v37  ;;  %617 = vmatprep.subr.mxu1 %v419_v48  ;;  %v407_v9 = vld [vmem:[%s1895_s1 + $0x208] sm:$0xff]  ;;  %v396_v10 = vld [vmem:[%s1895_s1 + $0x1b0] sm:$0xff]  ;;  %v406_v11 = vld [vmem:[%s1895_s1 + $0x200] sm:$0xff] }
  0x47   : > { %462 = vmatprep.subr.mxu0 %v349_v39  ;;  %618 = vmatpush1.msra.mxu1 %v418_v50  ;;  %v395_v12 = vld [vmem:[%s1895_s1 + $0x1a8] sm:$0xff]  ;;  %v296_v13 = vld [vmem:[%s1377_s13 + $0x10] sm:$0xff]  ;;  %v394_v14 = vld [vmem:[%s1895_s1 + $0x1a0] sm:$0xff] }
  0x48   : > { %463 = vmatpush1.msra.mxu0 %v348_v41  ;;  %619 = vmatprep.subr.mxu1 %v417_v52  ;;  %v295_v15 = vld [vmem:[%s1377_s13 + $0x8] sm:$0xff]  ;;  %v393_v16 = vld [vmem:[%s1895_s1 + $0x198] sm:$0xff]  ;;  %v392_v17 = vld [vmem:[%s1895_s1 + $0x190] sm:$0xff] }
  0x49   : > { %464 = vmatprep.subr.mxu0 %v347_v43  ;;  %620 = vmatpush1.msra.mxu1 %v416_v54  ;;  %v391_v18 = vld [vmem:[%s1895_s1 + $0x188] sm:$0xff]  ;;  %v390_v20 = vld [vmem:[%s1895_s1 + $0x180] sm:$0xff]  ;;  %v389_v21 = vld [vmem:[%s1895_s1 + $0x178] sm:$0xff] }
  0x4a   : > { %465 = vmatpush1.msra.mxu0 %v346_v45  ;;  %621 = vmatprep.subr.mxu1 %v415_v56  ;;  %v299_v19 = vld [vmem:[%s1377_s13 + $0x28] sm:$0xff]  ;;  %v388_v22 = vld [vmem:[%s1895_s1 + $0x170] sm:$0xff]  ;;  %v302_v24 = vld [vmem:[%s1377_s13 + $0x40] sm:$0xff] }
  0x4b   : > { %466 = vmatprep.subr.mxu0 %v345_v47  ;;  %622 = vmatpush1.msra.mxu1 %v414_v58  ;;  %v387_v23 = vld [vmem:[%s1895_s1 + $0x168] sm:$0xff]  ;;  %v386_v25 = vld [vmem:[%s1895_s1 + $0x160] sm:$0xff]  ;;  %v385_v26 = vld [vmem:[%s1895_s1 + $0x158] sm:$0xff] }
  0x4c   : > { %467 = vmatpush1.msra.mxu0 %v344_v49  ;;  %623 = vmatprep.subr.mxu1 %v413_v60  ;;  %v384_v27 = vld [vmem:[%s1895_s1 + $0x150] sm:$0xff]  ;;  %v383_v28 = vld [vmem:[%s1895_s1 + $0x148] sm:$0xff]  ;;  %v305_v29 = vld [vmem:[%s1377_s13 + $0x58] sm:$0xff] }
  0x4d   : > { %468 = vmatprep.subr.mxu0 %v343_v51  ;;  %624 = vmatpush1.msra.mxu1 %v412_v62  ;;  %v382_v30 = vld [vmem:[%s1895_s1 + $0x140] sm:$0xff]  ;;  %v381_v31 = vld [vmem:[%s1895_s1 + $0x138] sm:$0xff]  ;;  %v380_v32 = vld [vmem:[%s1895_s1 + $0x130] sm:$0xff] }
  0x4e   : > { %469 = vmatpush1.msra.mxu0 %v342_v53  ;;  %625 = vmatprep.subr.mxu1 %v411_v1  ;;  %v379_v33 = vld [vmem:[%s1895_s1 + $0x128] sm:$0xff]  ;;  %v308_v34 = vld [vmem:[%s1377_s13 + $0x70] sm:$0xff]  ;;  %v378_v35 = vld [vmem:[%s1895_s1 + $0x120] sm:$0xff] }
  0x4f   : > { %470 = vmatprep.subr.mxu0 %v405_v55  ;;  %626 = vmatpush1.msra.mxu1 %v410_v3  ;;  %v377_v36 = vld [vmem:[%s1895_s1 + $0x118] sm:$0xff]  ;;  %v376_v37 = vld [vmem:[%s1895_s1 + $0x110] sm:$0xff]  ;;  %v375_v38 = vld [vmem:[%s1895_s1 + $0x108] sm:$0xff] }
  0x50   : > { %471 = vmatpush2.msra.mxu0 %v404_v57  ;;  %627 = vmatprep.subr.mxu1 %v409_v5  ;;  %v311_v39 = vld [vmem:[%s1377_s13 + $0x88] sm:$0xff]  ;;  %v374_v40 = vld [vmem:[%s1895_s1 + $0x100] sm:$0xff]  ;;  %v297_v44 = vld [vmem:[%s1377_s13 + $0x18] sm:$0xff] }
  0x51   : > { %472 = vmatprep.subr.mxu0 %v403_v59  ;;  %628 = vmatpush1.msra.mxu1 %v408_v7  ;;  %v294_v41 = vld [vmem:[%s1377_s13] sm:$0xff]  ;;  %v301_v45 = vld [vmem:[%s1377_s13 + $0x38] sm:$0xff]  ;;  %v300_v47 = vld [vmem:[%s1377_s13 + $0x30] sm:$0xff] }
  0x52   : > { %473 = vmatpush2.msra.mxu0 %v402_v61  ;;  %629 = vmatprep.subr.mxu1 %v407_v9  ;;  %v298_v42 = vld [vmem:[%s1377_s13 + $0x20] sm:$0xff]  ;;  %v317_v46 = vld [vmem:[%s1377_s13 + $0xb8] sm:$0xff]  ;;  %v304_v48 = vld [vmem:[%s1377_s13 + $0x50] sm:$0xff] }
  0x53   : > { %474 = vmatprep.subr.mxu0 %v401_v63  ;;  %630 = vmatpush1.msra.mxu1 %v406_v11  ;;  %v314_v43 = vld [vmem:[%s1377_s13 + $0xa0] sm:$0xff]  ;;  %v320_v49 = vld [vmem:[%s1377_s13 + $0xd0] sm:$0xff]  ;;  %v303_v50 = vld [vmem:[%s1377_s13 + $0x48] sm:$0xff] }
  0x54   : > { %475 = vmatpush2.msra.mxu0 %v400_v2  ;;  %664 = vmatmul.mubr.f32.vlgmr.msra.gmra.mxu1 %v296_v13  ;;  %v307_v51 = vld [vmem:[%s1377_s13 + $0x68] sm:$0xff]  ;;  %v306_v53 = vld [vmem:[%s1377_s13 + $0x60] sm:$0xff]  ;;  %v309_v56 = vld [vmem:[%s1377_s13 + $0x78] sm:$0xff] }
  0x55   : > { %476 = vmatprep.subr.mxu0 %v399_v4  ;;  %502 = vmatprep.mubr.f32.mxu0 %v295_v15  ;;  %v323_v52 = vld [vmem:[%s1377_s13 + $0xe8] sm:$0xff]  ;;  %v310_v54 = vld [vmem:[%s1377_s13 + $0x80] sm:$0xff]  ;;  %v313_v57 = vld [vmem:[%s1377_s13 + $0x98] sm:$0xff] }
  0x56   : > { %477 = vmatpush2.msra.mxu0 %v398_v6  ;;  %669 = vmatprep.mubr.f32.mxu1 %v1268_v0  ;;  %v326_v55 = vld [vmem:[%s1377_s13 + $0x100] sm:$0xff]  ;;  %v329_v58 = vld [vmem:[%s1377_s13 + $0x118] sm:$0xff]  ;;  %v312_v59 = vld [vmem:[%s1377_s13 + $0x90] sm:$0xff] }
  0x57   : > { %478 = vmatprep.subr.mxu0 %v397_v8  ;;  %v316_v60 = vld [vmem:[%s1377_s13 + $0xb0] sm:$0xff]  ;;  %v315_v62 = vld [vmem:[%s1377_s13 + $0xa8] sm:$0xff]  ;;  %v318_v2 = vld [vmem:[%s1377_s13 + $0xc0] sm:$0xff] }
  0x58   : > { %479 = vmatpush2.msra.mxu0 %v396_v10  ;;  %670 = vmatmul.mubr.f32.gmra.mxu1 %v299_v19  ;;  %v332_v61 = vld [vmem:[%s1377_s13 + $0x130] sm:$0xff]  ;;  %v319_v63 = vld [vmem:[%s1377_s13 + $0xc8] sm:$0xff]  ;;  %v322_v3 = vld [vmem:[%s1377_s13 + $0xe0] sm:$0xff] }
  0x59   : > { %480 = vmatprep.subr.mxu0 %v395_v12  ;;  %675 = vmatprep.mubr.f32.mxu1 %v1268_v0  ;;  %v335_v1 = vld [vmem:[%s1377_s13 + $0x148] sm:$0xff]  ;;  %v338_v4 = vld [vmem:[%s1377_s13 + $0x160] sm:$0xff]  ;;  %v321_v5 = vld [vmem:[%s1377_s13 + $0xd8] sm:$0xff] }
  0x5a   : > { %481 = vmatpush2.msra.mxu0 %v394_v14  ;;  %v325_v6 = vld [vmem:[%s1377_s13 + $0xf8] sm:$0xff]  ;;  %v324_v8 = vld [vmem:[%s1377_s13 + $0xf0] sm:$0xff]  ;;  %v327_v10 = vld [vmem:[%s1377_s13 + $0x108] sm:$0xff] }
  0x5b   : > { %482 = vmatprep.subr.mxu0 %v393_v16  ;;  %v341_v7 = vld [vmem:[%s1377_s13 + $0x178] sm:$0xff]  ;;  %v328_v9 = vld [vmem:[%s1377_s13 + $0x110] sm:$0xff]  ;;  %v331_v11 = vld [vmem:[%s1377_s13 + $0x128] sm:$0xff] }
  0x5c   : > { %483 = vmatpush2.msra.mxu0 %v392_v17  ;;  %676 = vmatmul.mubr.f32.gmra.mxu1 %v302_v24  ;;  %v330_v12 = vld [vmem:[%s1377_s13 + $0x120] sm:$0xff]  ;;  %v337_v14 = vld [vmem:[%s1377_s13 + $0x158] sm:$0xff]  ;;  %v336_v15 = vld [vmem:[%s1377_s13 + $0x150] sm:$0xff] }
  0x5d   : > { %484 = vmatprep.subr.mxu0 %v391_v18  ;;  %681 = vmatprep.mubr.f32.mxu1 %v1268_v0  ;;  %v334_v13 = vld [vmem:[%s1377_s13 + $0x140] sm:$0xff]  ;;  %v340_v16 = vld [vmem:[%s1377_s13 + $0x170] sm:$0xff]  ;;  %v339_v17 = vld [vmem:[%s1377_s13 + $0x168] sm:$0xff] }
  0x5e   : > { %485 = vmatpush2.msra.mxu0 %v390_v20 }
  0x5f   : > { %486 = vmatprep.subr.mxu0 %v389_v21 }
  0x60   : > { %487 = vmatpush2.msra.mxu0 %v388_v22  ;;  %682 = vmatmul.mubr.f32.gmra.mxu1 %v305_v29 }
  0x61   : > { %488 = vmatprep.subr.mxu0 %v387_v23  ;;  %687 = vmatprep.mubr.f32.mxu1 %v1268_v0 }
  0x62   : > { %489 = vmatpush2.msra.mxu0 %v386_v25 }
  0x63   : > { %490 = vmatprep.subr.mxu0 %v385_v26 }
  0x64   : > { %491 = vmatpush2.msra.mxu0 %v384_v27  ;;  %688 = vmatmul.mubr.f32.gmra.mxu1 %v308_v34 }
  0x65   : > { %492 = vmatprep.subr.mxu0 %v383_v28  ;;  %693 = vmatprep.mubr.f32.mxu1 %v1268_v0 }
  0x66   : > { %493 = vmatpush2.msra.mxu0 %v382_v30 }
  0x67   : > { %494 = vmatprep.subr.mxu0 %v381_v31 }
  0x68   : > { %495 = vmatpush2.msra.mxu0 %v380_v32  ;;  %694 = vmatmul.mubr.f32.gmra.mxu1 %v311_v39 }
  0x69   : > { %496 = vmatprep.subr.mxu0 %v379_v33  ;;  %699 = vmatprep.mubr.f32.mxu1 %v1268_v0 }
  0x6a   : > { %497 = vmatpush2.msra.mxu0 %v378_v35 }
  0x6b   : > { %498 = vmatprep.subr.mxu0 %v377_v36 }
  0x6c   : > { %499 = vmatpush2.msra.mxu0 %v376_v37  ;;  %700 = vmatmul.mubr.f32.gmra.mxu1 %v314_v43 }
  0x6d   : > { %500 = vmatprep.subr.mxu0 %v375_v38  ;;  %705 = vmatprep.mubr.f32.mxu1 %v1268_v0 }
  0x6e   : > { %501 = vmatpush2.msra.mxu0 %v374_v40 }
  0x6f   : > { %503 = vmatmul.mubr.f32.vlgmr.msra.gmra.mxu0 %v294_v41 }
  0x70   : > { %508 = vmatprep.mubr.f32.mxu0 %v298_v42  ;;  %706 = vmatmul.mubr.f32.gmra.mxu1 %v317_v46 }
  0x71   : > { %711 = vmatprep.mubr.f32.mxu1 %v1268_v0 }
  0x73   : > { %509 = vmatmul.mubr.f32.gmra.mxu0 %v297_v44 }
  0x74   : > { %514 = vmatprep.mubr.f32.mxu0 %v301_v45  ;;  %712 = vmatmul.mubr.f32.gmra.mxu1 %v320_v49 }
  0x75   : > { %717 = vmatprep.mubr.f32.mxu1 %v1268_v0 }
  0x77   : > { %515 = vmatmul.mubr.f32.gmra.mxu0 %v300_v47 }
  0x78   : > { %520 = vmatprep.mubr.f32.mxu0 %v304_v48  ;;  %718 = vmatmul.mubr.f32.gmra.mxu1 %v323_v52 }
  0x79   : > { %723 = vmatprep.mubr.f32.mxu1 %v1268_v0 }
  0x7b   : > { %521 = vmatmul.mubr.f32.gmra.mxu0 %v303_v50 }
  0x7c   : > { %526 = vmatprep.mubr.f32.mxu0 %v307_v51  ;;  %724 = vmatmul.mubr.f32.gmra.mxu1 %v326_v55 }
  0x7d   : > { %729 = vmatprep.mubr.f32.mxu1 %v1268_v0 }
  0x7f   : > { %527 = vmatmul.mubr.f32.gmra.mxu0 %v306_v53 }
  0x80   : > { %532 = vmatprep.mubr.f32.mxu0 %v310_v54  ;;  %730 = vmatmul.mubr.f32.gmra.mxu1 %v329_v58 }
  0x81   : > { %735 = vmatprep.mubr.f32.mxu1 %v1268_v0 }
  0x83   : > { %533 = vmatmul.mubr.f32.gmra.mxu0 %v309_v56 }
  0x84   : > { %538 = vmatprep.mubr.f32.mxu0 %v313_v57  ;;  %736 = vmatmul.mubr.f32.gmra.mxu1 %v332_v61 }
  0x85   : > { %741 = vmatprep.mubr.f32.mxu1 %v1268_v0 }
  0x87   : > { %539 = vmatmul.mubr.f32.gmra.mxu0 %v312_v59 }
  0x88   : > { %544 = vmatprep.mubr.f32.mxu0 %v316_v60  ;;  %742 = vmatmul.mubr.f32.gmra.mxu1 %v335_v1 }
  0x89   : > { %747 = vmatprep.mubr.f32.mxu1 %v1268_v0 }
  0x8b   : > { %545 = vmatmul.mubr.f32.gmra.mxu0 %v315_v62 }
  0x8c   : > { %550 = vmatprep.mubr.f32.mxu0 %v319_v63  ;;  %748 = vmatmul.mubr.f32.gmra.mxu1 %v338_v4 }
  0x8d   : > { %753 = vmatprep.mubr.f32.mxu1 %v1268_v0  ;;  %v333_v0 = vld [vmem:[%s1377_s13 + $0x138] sm:$0xff] }
  0x8f   : > { %551 = vmatmul.mubr.f32.gmra.mxu0 %v318_v2 }
  0x90   : > { %556 = vmatprep.mubr.f32.mxu0 %v322_v3  ;;  %754 = vmatmul.mubr.f32.gmra.mxu1 %v341_v7 }
  0x93   : > { %557 = vmatmul.mubr.f32.gmra.mxu0 %v321_v5 }
  0x94   : > { %562 = vmatprep.mubr.f32.mxu0 %v325_v6 }
  0x97   : > { %563 = vmatmul.mubr.f32.gmra.mxu0 %v324_v8 }
  0x98   : > { %568 = vmatprep.mubr.f32.mxu0 %v328_v9 }
  0x9b   : > { %569 = vmatmul.mubr.f32.gmra.mxu0 %v327_v10 }
  0x9c   : > { %574 = vmatprep.mubr.f32.mxu0 %v331_v11 }
  0x9f   : > { %575 = vmatmul.mubr.f32.gmra.mxu0 %v330_v12 }
  0xa0   : > { %580 = vmatprep.mubr.f32.mxu0 %v334_v13 }
  0xa3   : > { %581 = vmatmul.mubr.f32.gmra.mxu0 %v333_v0 }
  0xa4   : > { %586 = vmatprep.mubr.f32.mxu0 %v337_v14 }
  0xa7   : > { %587 = vmatmul.mubr.f32.gmra.mxu0 %v336_v15 }
  0xa8   : > { %592 = vmatprep.mubr.f32.mxu0 %v340_v16 }
  0xab   : > { %593 = vmatmul.mubr.f32.gmra.mxu0 %v339_v17 }
 0x114   : > { %v665_v18 = vpop.f32.mrf.mxu1 }
 0x116   : > { %v667_v19 = vpop.f32.mrf.mxu1 }
 0x118   : > { %v671_v20 = vpop.f32.mrf.mxu1 }
 0x11a   : > { %v673_v21 = vpop.f32.mrf.mxu1 }
 0x11c   : > { %v677_v22 = vpop.f32.mrf.mxu1 }
 0x11e   : > { %v679_v23 = vpop.f32.mrf.mxu1 }
 0x120   : > { %v683_v24 = vpop.f32.mrf.mxu1 }
 0x122   : > { %v685_v25 = vpop.f32.mrf.mxu1 }
 0x124   : > { %v689_v26 = vpop.f32.mrf.mxu1 }
 0x126   : > { %v691_v27 = vpop.f32.mrf.mxu1 }
 0x128   : > { %v695_v28 = vpop.f32.mrf.mxu1 }
 0x12a   : > { %v697_v30 = vpop.f32.mrf.mxu1 }
 0x12c   : > { %v701_v33 = vpop.f32.mrf.mxu1 }
 0x12e   : > { %v703_v36 = vpop.f32.mrf.mxu1 }
 0x12f   : > { %v504_v29 = vpop.f32.mrf.mxu0 }
 0x130   : > { %v666_v31 = vadd.f32 %v665_v18, %v504_v29  ;;  %v707_v39 = vpop.f32.mrf.mxu1 }
 0x131   : > { %v506_v32 = vpop.f32.mrf.mxu0 }
 0x132   : > { %761 = vst.msk [vmem:[%s1744_s23] sm:$0xff] %vm760_vm0, %v666_v31  ;;  %v668_v34 = vadd.f32 %v667_v19, %v506_v32  ;;  %793 = vrot.lane.b32.xlu0 %v666_v31, %s1269_s30  ;;  %v709_v42 = vpop.f32.mrf.mxu1 }
 0x133   : > { %v510_v35 = vpop.f32.mrf.mxu0 }
 0x134   : > { %857 = vst.msk [vmem:[%s1750_s29] sm:$0xff] %vm760_vm0, %v668_v34  ;;  %v672_v37 = vadd.f32 %v671_v20, %v510_v35  ;;  %v713_v45 = vpop.f32.mrf.mxu1 }
 0x135   : > { %v512_v38 = vpop.f32.mrf.mxu0 }
 0x136   : > { %762 = vst.msk [vmem:[%s1744_s23 + $0x8] sm:$0xff] %vm760_vm0, %v672_v37  ;;  %v674_v40 = vadd.f32 %v673_v21, %v512_v38  ;;  %795 = vrot.lane.b32.xlu0 %v672_v37, %s1269_s30  ;;  %v715_v48 = vpop.f32.mrf.mxu1 }
 0x137   : > { %v516_v41 = vpop.f32.mrf.mxu0 }
 0x138   : > { %858 = vst.msk [vmem:[%s1750_s29 + $0x8] sm:$0xff] %vm760_vm0, %v674_v40  ;;  %v678_v43 = vadd.f32 %v677_v22, %v516_v41  ;;  %v719_v51 = vpop.f32.mrf.mxu1 }
 0x139   : > { %v518_v44 = vpop.f32.mrf.mxu0 }
 0x13a   : > { %763 = vst.msk [vmem:[%s1744_s23 + $0x10] sm:$0xff] %vm760_vm0, %v678_v43  ;;  %v680_v46 = vadd.f32 %v679_v23, %v518_v44  ;;  %797 = vrot.lane.b32.xlu1 %v678_v43, %s1269_s30  ;;  %v721_v54 = vpop.f32.mrf.mxu1 }
 0x13b   : > { %v522_v47 = vpop.f32.mrf.mxu0 }
 0x13c   : > { %859 = vst.msk [vmem:[%s1750_s29 + $0x10] sm:$0xff] %vm760_vm0, %v680_v46  ;;  %v684_v49 = vadd.f32 %v683_v24, %v522_v47  ;;  %v725_v57 = vpop.f32.mrf.mxu1 }
 0x13d   : > { %v524_v50 = vpop.f32.mrf.mxu0 }
 0x13e   : > { %764 = vst.msk [vmem:[%s1744_s23 + $0x18] sm:$0xff] %vm760_vm0, %v684_v49  ;;  %v686_v52 = vadd.f32 %v685_v25, %v524_v50  ;;  %799 = vrot.lane.b32.xlu1 %v684_v49, %s1269_s30  ;;  %v727_v62 = vpop.f32.mrf.mxu1 }
 0x13f   : > { %v528_v53 = vpop.f32.mrf.mxu0 }
 0x140   : > { %860 = vst.msk [vmem:[%s1750_s29 + $0x18] sm:$0xff] %vm760_vm0, %v686_v52  ;;  %v690_v55 = vadd.f32 %v689_v26, %v528_v53  ;;  %v731_v4 = vpop.f32.mrf.mxu1 }
 0x141   : > { %v530_v56 = vpop.f32.mrf.mxu0 }
 0x142   : > { %765 = vst.msk [vmem:[%s1744_s23 + $0x20] sm:$0xff] %vm760_vm0, %v690_v55  ;;  %v692_v58 = vadd.f32 %v691_v27, %v530_v56  ;;  %801 = vrot.lane.b32.xlu0 %v690_v55, %s1269_s30  ;;  %v733_v9 = vpop.f32.mrf.mxu1 }
 0x143   : > { %v534_v59 = vpop.f32.mrf.mxu0 }
 0x144   : > { %861 = vst.msk [vmem:[%s1750_s29 + $0x20] sm:$0xff] %vm760_vm0, %v692_v58  ;;  %v696_v60 = vadd.f32 %v695_v28, %v534_v59  ;;  %v737_v0 = vpop.f32.mrf.mxu1 }
 0x145   : > { %v536_v61 = vpop.f32.mrf.mxu0 }
 0x146   : > { %766 = vst.msk [vmem:[%s1744_s23 + $0x28] sm:$0xff] %vm760_vm0, %v696_v60  ;;  %v698_v63 = vadd.f32 %v697_v30, %v536_v61  ;;  %803 = vrot.lane.b32.xlu1 %v696_v60, %s1269_s30  ;;  %v739_v18 = vpop.f32.mrf.mxu1 }
 0x147   : > { %v540_v1 = vpop.f32.mrf.mxu0 }
 0x148   : > { %862 = vst.msk [vmem:[%s1750_s29 + $0x28] sm:$0xff] %vm760_vm0, %v698_v63  ;;  %v702_v2 = vadd.f32 %v701_v33, %v540_v1  ;;  %v743_v23 = vpop.f32.mrf.mxu1 }
 0x149   : > { %v542_v3 = vpop.f32.mrf.mxu0 }
 0x14a   : > { %767 = vst.msk [vmem:[%s1744_s23 + $0x30] sm:$0xff] %vm760_vm0, %v702_v2  ;;  %v704_v5 = vadd.f32 %v703_v36, %v542_v3  ;;  %805 = vrot.lane.b32.xlu0 %v702_v2, %s1269_s30  ;;  %v745_v28 = vpop.f32.mrf.mxu1 }
 0x14b   : > { %v546_v6 = vpop.f32.mrf.mxu0 }
 0x14c   : > { %863 = vst.msk [vmem:[%s1750_s29 + $0x30] sm:$0xff] %vm760_vm0, %v704_v5  ;;  %v708_v7 = vadd.f32 %v707_v39, %v546_v6  ;;  %v749_v33 = vpop.f32.mrf.mxu1 }
 0x14d   : > { %v548_v8 = vpop.f32.mrf.mxu0 }
 0x14e   : > { %768 = vst.msk [vmem:[%s1744_s23 + $0x38] sm:$0xff] %vm760_vm0, %v708_v7  ;;  %v710_v10 = vadd.f32 %v709_v42, %v548_v8  ;;  %807 = vrot.lane.b32.xlu1 %v708_v7, %s1269_s30  ;;  %v751_v38 = vpop.f32.mrf.mxu1 }
 0x14f   : > { %v552_v11 = vpop.f32.mrf.mxu0 }
 0x150   : > { %864 = vst.msk [vmem:[%s1750_s29 + $0x38] sm:$0xff] %vm760_vm0, %v710_v10  ;;  %v714_v12 = vadd.f32 %v713_v45, %v552_v11  ;;  %v755_v43 = vpop.f32.mrf.mxu1 }
 0x151   : > { %v554_v13 = vpop.f32.mrf.mxu0 }
 0x152   : > { %769 = vst.msk [vmem:[%s1744_s23 + $0x40] sm:$0xff] %vm760_vm0, %v714_v12  ;;  %v716_v14 = vadd.f32 %v715_v48, %v554_v13  ;;  %809 = vrot.lane.b32.xlu0 %v714_v12, %s1269_s30  ;;  %v757_v47 = vpop.f32.mrf.mxu1 }
 0x153   : > { %v558_v15 = vpop.f32.mrf.mxu0 }
 0x154   : > { %865 = vst.msk [vmem:[%s1750_s29 + $0x40] sm:$0xff] %vm760_vm0, %v716_v14  ;;  %v720_v16 = vadd.f32 %v719_v51, %v558_v15 }
 0x155   : > { %v560_v17 = vpop.f32.mrf.mxu0 }
 0x156   : > { %770 = vst.msk [vmem:[%s1744_s23 + $0x48] sm:$0xff] %vm760_vm0, %v720_v16  ;;  %v722_v19 = vadd.f32 %v721_v54, %v560_v17  ;;  %811 = vrot.lane.b32.xlu1 %v720_v16, %s1269_s30 }
 0x157   : > { %v564_v20 = vpop.f32.mrf.mxu0 }
 0x158   : > { %866 = vst.msk [vmem:[%s1750_s29 + $0x48] sm:$0xff] %vm760_vm0, %v722_v19  ;;  %v726_v21 = vadd.f32 %v725_v57, %v564_v20 }
 0x159   : > { %v566_v22 = vpop.f32.mrf.mxu0 }
 0x15a   : > { %771 = vst.msk [vmem:[%s1744_s23 + $0x50] sm:$0xff] %vm760_vm0, %v726_v21  ;;  %v728_v24 = vadd.f32 %v727_v62, %v566_v22  ;;  %813 = vrot.lane.b32.xlu0 %v726_v21, %s1269_s30 }
 0x15b   : > { %v570_v25 = vpop.f32.mrf.mxu0 }
 0x15c   : > { %867 = vst.msk [vmem:[%s1750_s29 + $0x50] sm:$0xff] %vm760_vm0, %v728_v24  ;;  %v732_v26 = vadd.f32 %v731_v4, %v570_v25 }
 0x15d   : > { %v572_v27 = vpop.f32.mrf.mxu0 }
 0x15e   : > { %772 = vst.msk [vmem:[%s1744_s23 + $0x58] sm:$0xff] %vm760_vm0, %v732_v26  ;;  %v734_v29 = vadd.f32 %v733_v9, %v572_v27  ;;  %815 = vrot.lane.b32.xlu1 %v732_v26, %s1269_s30 }
 0x15f   : > { %v576_v30 = vpop.f32.mrf.mxu0 }
 0x160   : > { %868 = vst.msk [vmem:[%s1750_s29 + $0x58] sm:$0xff] %vm760_vm0, %v734_v29  ;;  %v738_v31 = vadd.f32 %v737_v0, %v576_v30 }
 0x161   : > { %v578_v32 = vpop.f32.mrf.mxu0 }
 0x162   : > { %773 = vst.msk [vmem:[%s1744_s23 + $0x60] sm:$0xff] %vm760_vm0, %v738_v31  ;;  %v740_v34 = vadd.f32 %v739_v18, %v578_v32  ;;  %817 = vrot.lane.b32.xlu0 %v738_v31, %s1269_s30 }
 0x163   : > { %v582_v35 = vpop.f32.mrf.mxu0 }
 0x164   : > { %869 = vst.msk [vmem:[%s1750_s29 + $0x60] sm:$0xff] %vm760_vm0, %v740_v34  ;;  %v744_v36 = vadd.f32 %v743_v23, %v582_v35 }
 0x165   : > { %v584_v37 = vpop.f32.mrf.mxu0 }
 0x166   : > { %774 = vst.msk [vmem:[%s1744_s23 + $0x68] sm:$0xff] %vm760_vm0, %v744_v36  ;;  %v746_v39 = vadd.f32 %v745_v28, %v584_v37  ;;  %819 = vrot.lane.b32.xlu1 %v744_v36, %s1269_s30 }
 0x167   : > { %v588_v40 = vpop.f32.mrf.mxu0 }
 0x168   : > { %870 = vst.msk [vmem:[%s1750_s29 + $0x68] sm:$0xff] %vm760_vm0, %v746_v39  ;;  %v750_v41 = vadd.f32 %v749_v33, %v588_v40 }
 0x169   : > { %v590_v42 = vpop.f32.mrf.mxu0 }
 0x16a   : > { %775 = vst.msk [vmem:[%s1744_s23 + $0x70] sm:$0xff] %vm760_vm0, %v750_v41  ;;  %v752_v44 = vadd.f32 %v751_v38, %v590_v42  ;;  %821 = vrot.lane.b32.xlu0 %v750_v41, %s1269_s30 }
 0x16b   : > { %v594_v45 = vpop.f32.mrf.mxu0 }
 0x16c   : > { %871 = vst.msk [vmem:[%s1750_s29 + $0x70] sm:$0xff] %vm760_vm0, %v752_v44  ;;  %v756_v46 = vadd.f32 %v755_v43, %v594_v45 }
 0x16d   : > { %v596_v48 = vpop.f32.mrf.mxu0 }
 0x16e   : > { %776 = vst.msk [vmem:[%s1744_s23 + $0x78] sm:$0xff] %vm760_vm0, %v756_v46  ;;  %v758_v49 = vadd.f32 %v757_v47, %v596_v48  ;;  %823 = vrot.lane.b32.xlu1 %v756_v46, %s1269_s30 }
 0x170   : > { %872 = vst.msk [vmem:[%s1750_s29 + $0x78] sm:$0xff] %vm760_vm0, %v758_v49 }
 0x1a4   : > { %v794_v50 = vpop.permute.xlu0 %793 }
 0x1a5   : > { %841 = vst.msk [vmem:[%s1836_s6] sm:$0xff] %vm760_vm0, %v794_v50 }
 0x1a8   : > { %v796_v51 = vpop.permute.xlu0 %795 }
 0x1a9   : > { %842 = vst.msk [vmem:[%s1836_s6 + $0x8] sm:$0xff] %vm760_vm0, %v796_v51 }
 0x1ac   : > { %v798_v52 = vpop.permute.xlu1 %797 }
 0x1ad   : > { %843 = vst.msk [vmem:[%s1836_s6 + $0x10] sm:$0xff] %vm760_vm0, %v798_v52 }
 0x1b0   : > { %v800_v53 = vpop.permute.xlu1 %799 }
 0x1b1   : > { %844 = vst.msk [vmem:[%s1836_s6 + $0x18] sm:$0xff] %vm760_vm0, %v800_v53 }
 0x1b4   : > { %v802_v54 = vpop.permute.xlu0 %801 }
 0x1b5   : > { %845 = vst.msk [vmem:[%s1836_s6 + $0x20] sm:$0xff] %vm760_vm0, %v802_v54 }
 0x1b8   : > { %v804_v55 = vpop.permute.xlu1 %803 }
 0x1b9   : > { %846 = vst.msk [vmem:[%s1836_s6 + $0x28] sm:$0xff] %vm760_vm0, %v804_v55 }
 0x1bc   : > { %v806_v56 = vpop.permute.xlu0 %805 }
 0x1bd   : > { %847 = vst.msk [vmem:[%s1836_s6 + $0x30] sm:$0xff] %vm760_vm0, %v806_v56 }
 0x1c0   : > { %v808_v57 = vpop.permute.xlu1 %807 }
 0x1c1   : > { %848 = vst.msk [vmem:[%s1836_s6 + $0x38] sm:$0xff] %vm760_vm0, %v808_v57 }
 0x1c4   : > { %v810_v58 = vpop.permute.xlu0 %809 }
 0x1c5   : > { %849 = vst.msk [vmem:[%s1836_s6 + $0x40] sm:$0xff] %vm760_vm0, %v810_v58 }
 0x1c8   : > { %v812_v59 = vpop.permute.xlu1 %811 }
 0x1c9   : > { %850 = vst.msk [vmem:[%s1836_s6 + $0x48] sm:$0xff] %vm760_vm0, %v812_v59 }
 0x1cc   : > { %v814_v60 = vpop.permute.xlu0 %813 }
 0x1cd   : > { %851 = vst.msk [vmem:[%s1836_s6 + $0x50] sm:$0xff] %vm760_vm0, %v814_v60 }
 0x1d0   : > { %v816_v61 = vpop.permute.xlu1 %815 }
 0x1d1   : > { %852 = vst.msk [vmem:[%s1836_s6 + $0x58] sm:$0xff] %vm760_vm0, %v816_v61 }
 0x1d4   : > { %v818_v62 = vpop.permute.xlu0 %817 }
 0x1d5   : > { %853 = vst.msk [vmem:[%s1836_s6 + $0x60] sm:$0xff] %vm760_vm0, %v818_v62 }
 0x1d8   : > { %v820_v63 = vpop.permute.xlu1 %819 }
 0x1d9   : > { %854 = vst.msk [vmem:[%s1836_s6 + $0x68] sm:$0xff] %vm760_vm0, %v820_v63 }
 0x1dc   : > { %v822_v1 = vpop.permute.xlu0 %821 }
 0x1dd   : > { %855 = vst.msk [vmem:[%s1836_s6 + $0x70] sm:$0xff] %vm760_vm0, %v822_v1 }
 0x1e0   : > { %v824_v2 = vpop.permute.xlu1 %823 }
 0x1e1   : > { %856 = vst.msk [vmem:[%s1836_s6 + $0x78] sm:$0xff] %vm760_vm0, %v824_v2 }
 0x1e2 PF: > { %s18_s22 = sadd.s32 1, %s1263_s22   ;;  %s1903_s9 = sld [smem:[#allocation5_spill]] }
 0x1e3   : > { %p15_p10 = scmp.ge.s32.totalorder %s18_s22, 6   ;;  %s1904_s15 = smov %s1239_s16 }
 0x1e4   : > { %s1905_s16 = smov %s1243_s17  ;;  %s1906_s17 = smov %s1361_s8 }
 0x1e5   : > { %s1907_s18 = smov %s1255_s20  ;;  %s1908_s19 = smov %s1259_s21 }
 0x1e6   : > { %s1909_s20 = smov %s1912_s24  ;;  %17 = sbr.rel (!%p15_p10) target bundleno = 5 (0x5), region = 92 }
 0x1e8   : > { %s1910_s21 = smov %s1903_s9 }
 0x1eb   :  { %953 = vsyncpa [#allocation3], 1 }
 0x1ec   :  { %955 = vsyncpa [#allocation3 + $0x1], 1 }

</bundles_post_ra>
